<compile_context>
chip_gen: v7x
topology: tpu7x:2x2x1
jax: 0.10.0
libtpu: 0.0.40
codegen_flags: <defaults>
</compile_context>

<pallas_src>
import functools

import jax
import jax.numpy as jnp
from jax import lax
from jax.experimental import pallas as pl
from jax.experimental.pallas import tpu as pltpu


def _round_up(x, m):
    return ((x + m - 1) // m) * m


def _pick_tb(B, D, K):
    """Pick the batch tile: as large as possible while keeping VMEM modest everywhere."""
    x_budget = 8 << 20        # double-buffered x tiles:      2 * TB * D * 4 bytes
    inter_budget = 8 << 20    # ~6 live (K, TB) f32 tiles:    6 * K * TB * 4 bytes
    tb = min(4096, x_budget // (2 * D * 4), inter_budget // (6 * K * 4))
    if tb >= 256:
        tb = (tb // 256) * 256            # MXU-friendly lane count on v6e/v7x
    else:
        tb = 128
    tb = min(tb, _round_up(max(B, 1), 128))   # no point tiling past the padded batch
    return max(128, int(tb))


def _vmem_limit_bytes(tb, D, K):
    """Estimate VMEM needs from the actual (lane/sublane padded) buffers + margin."""
    Dp = _round_up(D, 128)
    Kp = _round_up(K, 8)
    tbp = _round_up(tb, 128)
    b = 2 * tb * Dp * 4              # x double buffer
    b += 2 * Kp * Dp * 4             # centers double buffer
    b += 2 * 8 * tbp * 4             # labels row (padded to 8 sublanes)
    b += 2 * 2 * 8 * tbp * 4         # loss / acc lane-wise accumulator outputs
    b += 2 * 8 * Dp * 4              # xsq lane-wise accumulator output
    b += Kp * 128 * 4                # ||c||^2 scratch
    b += 8 * Kp * tbp * 4            # live (K, TB) f32 intermediates headroom
    b = int(b * 1.5) + (4 << 20)     # compiler-internal scratch margin
    return int(min(max(b, 16 << 20), 48 << 20))   # 48 MiB cap: safe on v7x's 64 MiB


def _upperbound_kmeans_kernel(
    x_ref,       # (TB, D)    f32 : current batch tile (pipelined, double-buffered)
    c_ref,       # (K, D)     f32 : centers (same block every step, stays resident)
    lab_ref,     # (1, TB)    i32 : labels tile, lane-dense
    loss_ref,    # (1, 1, TB) f32 : lane-wise partial loss accumulator (resident output)
    acc_ref,     # (1, 1, TB) i32 : lane-wise correct-count accumulator (resident output)
    xsq_ref,     # (1, 1, D)  f32 : per-feature partial sums of masked ||x||^2 (resident output)
    csq_ref,     # (K, 1)     f32 : VMEM scratch, ||c_k||^2 (hoisted per chunk)
    *, B, TB, K, n_steps,
):
    p = pl.program_id(0)          # parallel chunk (sharded across TensorCores on v7x)
    i = pl.program_id(1)          # reduction over batch tiles within the chunk
    t = p * n_steps + i           # logical tile index (may run past the last real tile)

    # One-time (per chunk) loop-invariant work + accumulator init.
    @pl.when(i == 0)
    def _():
        c = c_ref[...]
        csq_ref[...] = jnp.sum(c * c, axis=1, keepdims=True)
        loss_ref[...] = jnp.zeros_like(loss_ref)
        acc_ref[...] = jnp.zeros_like(acc_ref)
        xsq_ref[...] = jnp.zeros_like(xsq_ref)

    x = x_ref[...]                                                    # (TB, D)
    lab = lab_ref[...]                                                # (1, TB)

    # Validity of each lane (column): global sample index < B.  This also fully masks
    # padded-grid tail tiles whose index_map was clamped to the last real tile.
    col = t * TB + lax.broadcasted_iota(jnp.int32, (1, TB), 1)        # (1, TB)
    valid = col < B

    # Lane-dense distances WITHOUT the per-sample ||x||^2 term (constant over k, so the
    # argmin is unchanged; its loss contribution is folded back analytically).
    #   d[k, b] = ||c_k||^2 - 2 <x_b, c_k>
    xc = jnp.einsum("kd,bd->kb", c_ref[...], x,
                    preferred_element_type=jnp.float32)               # (K, TB) on the MXU
    d = csq_ref[...] - 2.0 * xc                                       # (K, TB)

    classes = lax.broadcasted_iota(jnp.int32, (K, TB), 0)             # (K, TB)
    mask = classes == lab                                             # (K, TB) bool

    # PyTorch divides by 3*(K-1); for K == 1 that is a runtime 0/0 -> nan, which we
    # reproduce via alpha = inf instead of a Python ZeroDivisionError at trace time.
    alpha = float("inf") if K == 1 else 1.0 / (3.0 * (K - 1))

    # Loss: one masked sublane reduction + one plain sublane reduction, accumulated
    # lane-wise into the resident output block (no cross-lane reduce per step).
    i_sum = jnp.sum(jnp.where(mask, d, 0.0), axis=0, keepdims=True)   # (1, TB)
    total = jnp.sum(d, axis=0, keepdims=True)                         # (1, TB)
    per_sample = i_sum * (1.0 + alpha) - total * alpha                # (1, TB)
    per_sample = jnp.where(valid, per_sample, 0.0)
    loss_ref[...] += per_sample[None]

    # ||x_b||^2 has net coefficient 2/3 in the loss (applied in the wrapper); accumulate
    # its per-feature column sums lane-wise in x's native layout.
    row = t * TB + lax.broadcasted_iota(jnp.int32, (TB, 1), 0)        # (TB, 1)
    xsq_ref[...] += jnp.sum(jnp.where(row < B, x * x, 0.0),
                            axis=0, keepdims=True)[None]              # (1, 1, D)

    # Accuracy: first argmin over classes equals the label (torch.min returns first min).
    mins = jnp.min(d, axis=0, keepdims=True)                          # (1, TB)
    first_idx = jnp.min(jnp.where(d == mins, classes, K),
                        axis=0, keepdims=True)                        # (1, TB)
    correct = jnp.logical_and(first_idx == lab, valid)
    acc_ref[...] += correct.astype(jnp.int32)[None]


def upperbound_kmeans_forward(x, centers, labels, *, tb=None, num_chunks=None):
    """x: (B, D) f32, centers: (K, D) f32, labels: (B,) int -> (loss f32, acc i32)."""
    B, D = x.shape
    K, _ = centers.shape

    if tb is None:
        tb = _pick_tb(B, D, K)
    tb = _round_up(int(tb), 128)              # labels row is lane-dense

    n_tiles = pl.cdiv(B, tb)
    if num_chunks is None:
        num_chunks = 2 if n_tiles >= 2 else 1   # use both TCs on v7x; harmless on v5e/v6e
    P = max(1, min(int(num_chunks), n_tiles))
    n_steps = pl.cdiv(n_tiles, P)

    x = x.astype(jnp.float32)
    centers = centers.astype(jnp.float32)
    lab_row = labels.reshape(1, B).astype(jnp.int32)

    def tile_idx(p, i):
        # Clamp the padded grid tail (P * n_steps may exceed n_tiles); the out-of-range
        # duplicate tile is fully neutralized inside the kernel via the col < B mask.
        return jnp.minimum(p * n_steps + i, n_tiles - 1)

    kernel = functools.partial(_upperbound_kmeans_kernel, B=B, TB=tb, K=K, n_steps=n_steps)

    cost = pl.CostEstimate(
        flops=int(2 * B * K * D + 8 * B * K),
        transcendentals=0,
        bytes_accessed=int(4 * (B * D + B + K * D + P * (2 * tb + D))),
    )

    loss_parts, acc_parts, xsq_parts = pl.pallas_call(
        kernel,
        out_shape=(
            jax.ShapeDtypeStruct((P, 1, tb), jnp.float32),   # lane-wise loss partials
            jax.ShapeDtypeStruct((P, 1, tb), jnp.int32),     # lane-wise correct counts
            jax.ShapeDtypeStruct((P, 1, D), jnp.float32),    # per-feature ||x||^2 partials
        ),
        grid_spec=pltpu.PrefetchScalarGridSpec(
            num_scalar_prefetch=0,
            grid=(P, n_steps),
            in_specs=[
                pl.BlockSpec((tb, D), lambda p, i: (tile_idx(p, i), 0)),   # x tile
                pl.BlockSpec((K, D), lambda p, i: (0, 0)),                 # centers (resident)
                pl.BlockSpec((1, tb), lambda p, i: (0, tile_idx(p, i))),   # labels tile
            ],
            out_specs=(
                pl.BlockSpec((1, 1, tb), lambda p, i: (p, 0, 0)),
                pl.BlockSpec((1, 1, tb), lambda p, i: (p, 0, 0)),
                pl.BlockSpec((1, 1, D), lambda p, i: (p, 0, 0)),
            ),
            scratch_shapes=[
                pltpu.VMEM((K, 1), jnp.float32),   # ||c_k||^2 (hoisted)
            ],
        ),
        compiler_params=pltpu.CompilerParams(
            dimension_semantics=("parallel", "arbitrary"),
            vmem_limit_bytes=_vmem_limit_bytes(tb, D, K),
        ),
        cost_estimate=cost,
    )(x, centers, lab_row)

    # Tiny finalization in plain JAX: cross-lane + cross-chunk reductions.
    loss = (jnp.sum(loss_parts) + (2.0 / 3.0) * jnp.sum(xsq_parts)) / B
    acc = jnp.sum(acc_parts)
    return loss, acc


def _reference(x, centers, labels):
    """Pure-JAX reference mirroring the PyTorch forward."""
    B, _ = x.shape
    K, _ = centers.shape
    dist = (
        jnp.sum(x * x, axis=1, keepdims=True)
        + jnp.sum(centers * centers, axis=1)[None, :]
        - 2.0 * x @ centers.T
    )
    mask = labels[:, None] == jnp.arange(K)[None, :]
    near_ind = jnp.argmin(dist, axis=1)
    acc = jnp.sum(near_ind == labels).astype(jnp.int32)
    i_sum = jnp.sum(dist * mask, axis=1)
    k_sum = jnp.sum(dist * (~mask), axis=1)
    loss = jnp.sum(i_sum - k_sum / (3.0 * (K - 1))) / B
    return loss, acc


if __name__ == "__main__":
    # Module hyperparameters (small, consistent with the module's forward).
    num_classes = 16   # K
    feat_dim = 32      # D

    key = jax.random.PRNGKey(0)
    kc, _ = jax.random.split(key)

    # Parameter: centers. In the PyTorch module they come from KMEANS on random data
    # and are then row-normalized to unit norm.
    # TODO(synk): KMEANS clustering init has no clean kernel equivalent; centers are
    # deterministic random unit-norm rows (same shape / normalization as the module).
    c_raw = jax.random.normal(kc, (num_classes, feat_dim), dtype=jnp.float32)
    centers = c_raw / jnp.sqrt(jnp.sum(c_raw * c_raw, axis=1, keepdims=True))

    def run_case(seed, batch, tb):
        kx, kl = jax.random.split(jax.random.PRNGKey(seed))
        x = jax.random.normal(kx, (batch, feat_dim), dtype=jnp.float32)
        labels = jax.random.randint(kl, (batch,), 0, num_classes, dtype=jnp.int32)
        loss, acc = upperbound_kmeans_forward(x, centers, labels, tb=tb)
        loss = jax.block_until_ready(loss)
        acc = jax.block_until_ready(acc)
        ref_loss, ref_acc = _reference(x, centers, labels)
        assert jnp.allclose(loss, ref_loss, rtol=1e-4, atol=1e-4), (batch, tb, loss, ref_loss)
        assert int(acc) == int(ref_acc), (batch, tb, int(acc), int(ref_acc))

    # Auto-picked tile: a single ragged tile, one chunk.
    run_case(0, 200, None)
    # Two tiles -> exercises the two-chunk ("parallel") split and the ragged tail mask.
    run_case(1, 200, 128)
    # Three tiles, two chunks -> exercises the clamped / fully-masked padded grid tail.
    run_case(2, 300, 128)

    print("KERNEL_OK")
</pallas_src>

<mosaic_0001>
module attributes {stable_mosaic.version = 11 : i64} {
  func.func @_upperbound_kmeans_kernel(%arg0: i32, %arg1: i32, %arg2: memref<256x32xf32, #tpu.memory_space<vmem>>, %arg3: memref<16x32xf32, #tpu.memory_space<vmem>>, %arg4: memref<1x256xi32, #tpu.memory_space<vmem>>, %arg5: memref<1x1x256xf32, #tpu.memory_space<vmem>>, %arg6: memref<1x1x256xi32, #tpu.memory_space<vmem>>, %arg7: memref<1x1x32xf32, #tpu.memory_space<vmem>>, %arg8: memref<16x1xf32, #tpu.memory_space<vmem>>) attributes {dimension_semantics = [#tpu.dimension_semantics<parallel>, #tpu.dimension_semantics<arbitrary>], iteration_bounds = array<i64: 1, 1>, scalar_prefetch = 0 : i64, scratch_operands = 1 : i64, tpu.core_type = #tpu.core_type<tc>, window_params = [{transform_indices = @transform_0, window_bounds = array<i64: 256, 32>}, {pipeline_mode = #tpu.pipeline_mode<synchronous>, transform_indices = @transform_1, window_bounds = array<i64: 16, 32>}, {transform_indices = @transform_2, window_bounds = array<i64: 1, 256>}, {transform_indices = @transform_3, window_bounds = array<i64: 1, 1, 256>}, {transform_indices = @transform_4, window_bounds = array<i64: 1, 1, 256>}, {transform_indices = @transform_5, window_bounds = array<i64: 1, 1, 32>}]} {
    %c1_i32 = arith.constant 1 : i32
    %0 = arith.muli %arg0, %c1_i32 : i32
    %1 = arith.addi %0, %arg1 : i32
    %c0_i32 = arith.constant 0 : i32
    %2 = arith.cmpi eq, %arg1, %c0_i32 : i32
    %3 = arith.extui %2 : i1 to i32
    %c0_i32_0 = arith.constant 0 : i32
    %4 = arith.cmpi ne, %3, %c0_i32_0 : i32
    scf.if %4 {
      %c0_39 = arith.constant 0 : index
      %c0_40 = arith.constant 0 : index
      %72 = vector.load %arg3[%c0_39, %c0_40] : memref<16x32xf32, #tpu.memory_space<vmem>>, vector<16x32xf32>
      %73 = arith.mulf %72, %72 : vector<16x32xf32>
      %cst_41 = arith.constant dense<0.000000e+00> : vector<16xf32>
      %74 = vector.multi_reduction <add>, %73, %cst_41 [1] : vector<16x32xf32> to vector<16xf32>
      %75 = vector.shape_cast %74 : vector<16xf32> to vector<16x1xf32>
      %c0_42 = arith.constant 0 : index
      %c0_43 = arith.constant 0 : index
      %76 = vector.load %arg8[%c0_42, %c0_43] : memref<16x1xf32, #tpu.memory_space<vmem>>, vector<16x1xf32>
      tpu.vector_store %arg8[%c0_42, %c0_43], %75 {strides = array<i32>} : memref<16x1xf32, #tpu.memory_space<vmem>>, vector<16x1xf32>,
      %cst_44 = arith.constant 0.000000e+00 : f32
      %77 = vector.broadcast %cst_44 : f32 to vector<1x1x256xf32>
      %c0_45 = arith.constant 0 : index
      %c0_46 = arith.constant 0 : index
      %c0_47 = arith.constant 0 : index
      %78 = vector.load %arg5[%c0_45, %c0_46, %c0_47] : memref<1x1x256xf32, #tpu.memory_space<vmem>>, vector<1x1x256xf32>
      tpu.vector_store %arg5[%c0_45, %c0_46, %c0_47], %77 {strides = array<i32>} : memref<1x1x256xf32, #tpu.memory_space<vmem>>, vector<1x1x256xf32>,
      %c0_i32_48 = arith.constant 0 : i32
      %79 = vector.broadcast %c0_i32_48 : i32 to vector<1x1x256xi32>
      %c0_49 = arith.constant 0 : index
      %c0_50 = arith.constant 0 : index
      %c0_51 = arith.constant 0 : index
      %80 = vector.load %arg6[%c0_49, %c0_50, %c0_51] : memref<1x1x256xi32, #tpu.memory_space<vmem>>, vector<1x1x256xi32>
      tpu.vector_store %arg6[%c0_49, %c0_50, %c0_51], %79 {strides = array<i32>} : memref<1x1x256xi32, #tpu.memory_space<vmem>>, vector<1x1x256xi32>,
      %cst_52 = arith.constant 0.000000e+00 : f32
      %81 = vector.broadcast %cst_52 : f32 to vector<1x1x32xf32>
      %c0_53 = arith.constant 0 : index
      %c0_54 = arith.constant 0 : index
      %c0_55 = arith.constant 0 : index
      %82 = vector.load %arg7[%c0_53, %c0_54, %c0_55] : memref<1x1x32xf32, #tpu.memory_space<vmem>>, vector<1x1x32xf32>
      tpu.vector_store %arg7[%c0_53, %c0_54, %c0_55], %81 {strides = array<i32>} : memref<1x1x32xf32, #tpu.memory_space<vmem>>, vector<1x1x32xf32>,
    } else {
    }
    %c0 = arith.constant 0 : index
    %c0_1 = arith.constant 0 : index
    %5 = vector.load %arg2[%c0, %c0_1] : memref<256x32xf32, #tpu.memory_space<vmem>>, vector<256x32xf32>
    %c0_2 = arith.constant 0 : index
    %c0_3 = arith.constant 0 : index
    %6 = vector.load %arg4[%c0_2, %c0_3] : memref<1x256xi32, #tpu.memory_space<vmem>>, vector<1x256xi32>
    %c256_i32 = arith.constant 256 : i32
    %7 = arith.muli %1, %c256_i32 : i32
    %8 = tpu.iota {dimensions = array<i32: 1>} : vector<1x256xi32>
    %9 = vector.broadcast %7 : i32 to vector<1x256xi32>
    %10 = arith.addi %9, %8 : vector<1x256xi32>
    %c200_i32 = arith.constant 200 : i32
    %11 = vector.broadcast %c200_i32 : i32 to vector<1x256xi32>
    %12 = arith.cmpi slt, %10, %11 : vector<1x256xi32>
    %c0_4 = arith.constant 0 : index
    %c0_5 = arith.constant 0 : index
    %13 = vector.load %arg3[%c0_4, %c0_5] : memref<16x32xf32, #tpu.memory_space<vmem>>, vector<16x32xf32>
    "tpu.trace_start"() <{level = 10 : i32, message = "kd,bd->kb"}> : () -> ()
    %cst = arith.constant dense<0.000000e+00> : vector<16x256xf32>
    %14 = tpu.matmul %13, %5, %cst {dimension_numbers = #tpu.dot_dimension_numbers<[1], [1], [0], [0], [0, 0, 1, 0], [], []>} : vector<16x32xf32>, vector<256x32xf32>, vector<16x256xf32> -> vector<16x256xf32>
    "tpu.trace_stop"() : () -> ()
    %c0_6 = arith.constant 0 : index
    %c0_7 = arith.constant 0 : index
    %15 = vector.load %arg8[%c0_6, %c0_7] : memref<16x1xf32, #tpu.memory_space<vmem>>, vector<16x1xf32>
    %cst_8 = arith.constant 2.000000e+00 : f32
    %16 = vector.broadcast %cst_8 : f32 to vector<16x256xf32>
    %17 = arith.mulf %16, %14 : vector<16x256xf32>
    %18 = vector.broadcast %15 : vector<16x1xf32> to vector<16x256xf32>
    %19 = arith.subf %18, %17 : vector<16x256xf32>
    %20 = tpu.iota {dimensions = array<i32: 0>} : vector<16x256xi32>
    %21 = vector.broadcast %6 : vector<1x256xi32> to vector<16x256xi32>
    %22 = arith.cmpi eq, %20, %21 : vector<16x256xi32>
    %cst_9 = arith.constant 0.000000e+00 : f32
    %23 = vector.broadcast %cst_9 : f32 to vector<16x256xf32>
    %24 = arith.select %22, %19, %23 : vector<16x256xi1>, vector<16x256xf32>
    %cst_10 = arith.constant dense<0.000000e+00> : vector<256xf32>
    %25 = vector.multi_reduction <add>, %24, %cst_10 [0] : vector<16x256xf32> to vector<256xf32>
    %26 = vector.shape_cast %25 : vector<256xf32> to vector<1x256xf32>
    %cst_11 = arith.constant dense<0.000000e+00> : vector<256xf32>
    %27 = vector.multi_reduction <add>, %19, %cst_11 [0] : vector<16x256xf32> to vector<256xf32>
    %28 = vector.shape_cast %27 : vector<256xf32> to vector<1x256xf32>
    %cst_12 = arith.constant 1.02222228 : f32
    %29 = vector.broadcast %cst_12 : f32 to vector<1x256xf32>
    %30 = arith.mulf %26, %29 : vector<1x256xf32>
    %cst_13 = arith.constant 0.0222222228 : f32
    %31 = vector.broadcast %cst_13 : f32 to vector<1x256xf32>
    %32 = arith.mulf %28, %31 : vector<1x256xf32>
    %33 = arith.subf %30, %32 : vector<1x256xf32>
    %cst_14 = arith.constant 0.000000e+00 : f32
    %34 = vector.broadcast %cst_14 : f32 to vector<1x256xf32>
    %35 = arith.select %12, %33, %34 : vector<1x256xi1>, vector<1x256xf32>
    %c0_15 = arith.constant 0 : index
    %c0_16 = arith.constant 0 : index
    %c0_17 = arith.constant 0 : index
    %36 = vector.load %arg5[%c0_15, %c0_16, %c0_17] : memref<1x1x256xf32, #tpu.memory_space<vmem>>, vector<1x1x256xf32>
    %37 = vector.shape_cast %35 : vector<1x256xf32> to vector<1x1x256xf32>
    %38 = arith.addf %36, %37 : vector<1x1x256xf32>
    %c0_18 = arith.constant 0 : index
    %c0_19 = arith.constant 0 : index
    %c0_20 = arith.constant 0 : index
    %39 = vector.load %arg5[%c0_18, %c0_19, %c0_20] : memref<1x1x256xf32, #tpu.memory_space<vmem>>, vector<1x1x256xf32>
    tpu.vector_store %arg5[%c0_18, %c0_19, %c0_20], %38 {strides = array<i32>} : memref<1x1x256xf32, #tpu.memory_space<vmem>>, vector<1x1x256xf32>,
    %c256_i32_21 = arith.constant 256 : i32
    %40 = arith.muli %1, %c256_i32_21 : i32
    %41 = tpu.iota {dimensions = array<i32: 0>} : vector<256x1xi32>
    %42 = vector.broadcast %40 : i32 to vector<256x1xi32>
    %43 = arith.addi %42, %41 : vector<256x1xi32>
    %c0_22 = arith.constant 0 : index
    %c0_23 = arith.constant 0 : index
    %c0_24 = arith.constant 0 : index
    %44 = vector.load %arg7[%c0_22, %c0_23, %c0_24] : memref<1x1x32xf32, #tpu.memory_space<vmem>>, vector<1x1x32xf32>
    %c200_i32_25 = arith.constant 200 : i32
    %45 = vector.broadcast %c200_i32_25 : i32 to vector<256x1xi32>
    %46 = arith.cmpi slt, %43, %45 : vector<256x1xi32>
    %47 = arith.mulf %5, %5 : vector<256x32xf32>
    %cst_26 = arith.constant 0.000000e+00 : f32
    %48 = vector.shape_cast %46 : vector<256x1xi1> to vector<256x1xi1>
    %49 = vector.broadcast %48 : vector<256x1xi1> to vector<256x32xi1>
    %50 = vector.broadcast %cst_26 : f32 to vector<256x32xf32>
    %51 = arith.select %49, %47, %50 : vector<256x32xi1>, vector<256x32xf32>
    %cst_27 = arith.constant dense<0.000000e+00> : vector<32xf32>
    %52 = vector.multi_reduction <add>, %51, %cst_27 [0] : vector<256x32xf32> to vector<32xf32>
    %53 = vector.shape_cast %52 : vector<32xf32> to vector<1x32xf32>
    %54 = vector.shape_cast %53 : vector<1x32xf32> to vector<1x1x32xf32>
    %55 = arith.addf %44, %54 : vector<1x1x32xf32>
    %c0_28 = arith.constant 0 : index
    %c0_29 = arith.constant 0 : index
    %c0_30 = arith.constant 0 : index
    %56 = vector.load %arg7[%c0_28, %c0_29, %c0_30] : memref<1x1x32xf32, #tpu.memory_space<vmem>>, vector<1x1x32xf32>
    tpu.vector_store %arg7[%c0_28, %c0_29, %c0_30], %55 {strides = array<i32>} : memref<1x1x32xf32, #tpu.memory_space<vmem>>, vector<1x1x32xf32>,
    %cst_31 = arith.constant dense<0x7F800000> : vector<256xf32>
    %57 = vector.multi_reduction <minimumf>, %19, %cst_31 [0] : vector<16x256xf32> to vector<256xf32>
    %58 = vector.shape_cast %57 : vector<256xf32> to vector<1x256xf32>
    %59 = vector.broadcast %58 : vector<1x256xf32> to vector<16x256xf32>
    %60 = arith.cmpf oeq, %19, %59 : vector<16x256xf32>
    %c16_i32 = arith.constant 16 : i32
    %61 = vector.broadcast %c16_i32 : i32 to vector<16x256xi32>
    %62 = arith.select %60, %20, %61 : vector<16x256xi1>, vector<16x256xi32>
    %cst_32 = arith.constant dense<2147483647> : vector<256xi32>
    %63 = vector.multi_reduction <minsi>, %62, %cst_32 [0] : vector<16x256xi32> to vector<256xi32>
    %64 = vector.shape_cast %63 : vector<256xi32> to vector<1x256xi32>
    %65 = arith.cmpi eq, %64, %6 : vector<1x256xi32>
    %66 = arith.andi %65, %12 : vector<1x256xi1>
    %c0_33 = arith.constant 0 : index
    %c0_34 = arith.constant 0 : index
    %c0_35 = arith.constant 0 : index
    %67 = vector.load %arg6[%c0_33, %c0_34, %c0_35] : memref<1x1x256xi32, #tpu.memory_space<vmem>>, vector<1x1x256xi32>
    %68 = arith.extui %66 : vector<1x256xi1> to vector<1x256xi32>
    %69 = vector.shape_cast %68 : vector<1x256xi32> to vector<1x1x256xi32>
    %70 = arith.addi %67, %69 : vector<1x1x256xi32>
    %c0_36 = arith.constant 0 : index
    %c0_37 = arith.constant 0 : index
    %c0_38 = arith.constant 0 : index
    %71 = vector.load %arg6[%c0_36, %c0_37, %c0_38] : memref<1x1x256xi32, #tpu.memory_space<vmem>>, vector<1x1x256xi32>
    tpu.vector_store %arg6[%c0_36, %c0_37, %c0_38], %70 {strides = array<i32>} : memref<1x1x256xi32, #tpu.memory_space<vmem>>, vector<1x1x256xi32>,
    return
  }
  func.func @transform_0(%arg0: i32, %arg1: i32) -> (i32, i32) {
    %c1_i32 = arith.constant 1 : i32
    %0 = arith.muli %arg0, %c1_i32 : i32
    %1 = arith.addi %0, %arg1 : i32
    %c0_i32 = arith.constant 0 : i32
    %2 = arith.minsi %1, %c0_i32 : i32
    %c0_i32_0 = arith.constant 0 : i32
    %c0_i32_1 = arith.constant 0 : i32
    return %2, %c0_i32_0 : i32, i32
  }
  func.func @transform_1(%arg0: i32, %arg1: i32) -> (i32, i32) {
    %c0_i32 = arith.constant 0 : i32
    %c0_i32_0 = arith.constant 0 : i32
    %c0_i32_1 = arith.constant 0 : i32
    return %c0_i32, %c0_i32_0 : i32, i32
  }
  func.func @transform_2(%arg0: i32, %arg1: i32) -> (i32, i32) {
    %c1_i32 = arith.constant 1 : i32
    %0 = arith.muli %arg0, %c1_i32 : i32
    %1 = arith.addi %0, %arg1 : i32
    %c0_i32 = arith.constant 0 : i32
    %2 = arith.minsi %1, %c0_i32 : i32
    %c0_i32_0 = arith.constant 0 : i32
    %c0_i32_1 = arith.constant 0 : i32
    return %c0_i32_0, %2 : i32, i32
  }
  func.func @transform_3(%arg0: i32, %arg1: i32) -> (i32, i32, i32) {
    %c0_i32 = arith.constant 0 : i32
    %c0_i32_0 = arith.constant 0 : i32
    %c0_i32_1 = arith.constant 0 : i32
    return %arg0, %c0_i32, %c0_i32_0 : i32, i32, i32
  }
  func.func @transform_4(%arg0: i32, %arg1: i32) -> (i32, i32, i32) {
    %c0_i32 = arith.constant 0 : i32
    %c0_i32_0 = arith.constant 0 : i32
    %c0_i32_1 = arith.constant 0 : i32
    return %arg0, %c0_i32, %c0_i32_0 : i32, i32, i32
  }
  func.func @transform_5(%arg0: i32, %arg1: i32) -> (i32, i32, i32) {
    %c0_i32 = arith.constant 0 : i32
    %c0_i32_0 = arith.constant 0 : i32
    %c0_i32_1 = arith.constant 0 : i32
    return %arg0, %c0_i32, %c0_i32_0 : i32, i32, i32
  }
}

</mosaic_0001>

<bundles_post_ra>
// kernel: tpu_custom_call.1
= control target key start
LH: loop header
LB: loop body
LE: loop exit
PB: predicated region body
PF: predicated region fallthrough
CT: control target
= control target key end

     0   :  { %11 = vsyncpa [#allocation4], 0  ;;  %vm99_vm0 = vcmask 261120   ;;  %s1466_s0 = inlined_call_operand.vmem [shape: f32[200,32], index: 0, kind: input, shape index: {}]   ;;  %s1467_s1 = inlined_call_operand.vmem [shape: f32[16,32], index: 1, kind: input, shape index: {}]   ;;  %s1468_s2 = inlined_call_operand.vmem [shape: s32[1,200], index: 2, kind: input, shape index: {}]   ;;  %s1469_s3 = inlined_call_operand.hbm [shape: f32[1,1,256], index: 3, kind: output, shape index: {0}]   ;;  %s1470_s4 = inlined_call_operand.hbm [shape: s32[1,1,256], index: 4, kind: output, shape index: {1}]   ;;  %s1471_s5 = inlined_call_operand.hbm [shape: f32[1,1,32], index: 5, kind: output, shape index: {2}]  }
   0x1   :  { %v1105_v0 = vld [vmem:[%s1466_s0 + $0x80] sm:$0xff]  ;;  %v1110_v1 = vld [vmem:[%s1466_s0 + $0x88] sm:$0xff]  ;;  %vm1119_vm1 = vmpackc.low %vm99_vm0, %vm99_vm0 }
   0x2   :  { %v117_v2 = vld [vmem:[%s1466_s0] sm:$0xff]  ;;  %v924_v3 = vpack.c.bf16 %v1110_v1, %v1105_v0  ;;  %v118_v5 = vld [vmem:[%s1466_s0 + $0x8] sm:$0xff]  ;;  %v1141_v12 = vld [vmem:[%s1466_s0 + $0x90] sm:$0xff] }
   0x3   :  { %v536_v6 = vmul.f32 %v117_v2, %v117_v2  ;;  %v1129_v7 = vld [vmem:[%s1467_s1] sm:$0xff]  ;;  %v927_v8 = vpack.c.bf16 %v118_v5, %v117_v2  ;;  %v537_v9 = vmul.f32 %v118_v5, %v118_v5  ;;  %v1136_v11 = vld [vmem:[%s1467_s1 + $0x8] sm:$0xff]  ;;  %v1146_v13 = vld [vmem:[%s1466_s0 + $0x98] sm:$0xff] }
   0x4   :  { %v97_v10 = vmul.f32 %v1129_v7, %v1129_v7  ;;  %920 = vmatprep.mubr.msk.f32.mxu0 %vm99_vm0, %v1129_v7  ;;  %926 = vmatprep.subr.msk.bf16.mxu0 %vm1119_vm1, %v924_v3  ;;  %v98_v15 = vmul.f32 %v1136_v11, %v1136_v11  ;;  %v930_v18 = vpack.c.bf16 %v1146_v13, %v1141_v12  ;;  %v119_v19 = vld [vmem:[%s1466_s0 + $0x10] sm:$0xff]  ;;  %v120_v20 = vld [vmem:[%s1466_s0 + $0x18] sm:$0xff]  ;;  %v1181_v25 = vld [vmem:[%s1466_s0 + $0xa0] sm:$0xff] }
   0x5   :  { %v664_v14 = vsel %vm99_vm0, %v536_v6, 0.0  ;;  %972 = vmatprep.subr.msk.bf16.mxu1 %vm1119_vm1, %v924_v3  ;;  %929 = vmatpush3.bf16.xpose.msk.msra.mxu0 %vm1119_vm1, %v927_v8  ;;  %v665_v16 = vsel %vm99_vm0, %v537_v9, 0.0  ;;  %v538_v23 = vmul.f32 %v119_v19, %v119_v19  ;;  %v539_v24 = vmul.f32 %v120_v20, %v120_v20  ;;  %v1186_v26 = vld [vmem:[%s1466_s0 + $0xa8] sm:$0xff]  ;;  %v121_v28 = vld [vmem:[%s1466_s0 + $0x20] sm:$0xff]  ;;  %v123_v37 = vld [vmem:[%s1466_s0 + $0x30] sm:$0xff] }
   0x6   :  { %v100_v17 = vsel %vm99_vm0, %v97_v10, 0.0  ;;  %980 = vmatpush3.bf16.xpose.msk.msra.mxu1 %vm1119_vm1, %v927_v8  ;;  %v666_v21 = vadd.f32 %v665_v16, %v664_v14  ;;  %922 = vmatprep.mubr.msk.f32.mxu1 %vm99_vm0, %v1136_v11  ;;  %v103_v22 = vsel %vm99_vm0, %v98_v15, 0.0  ;;  %v933_v27 = vpack.c.bf16 %v120_v20, %v119_v19  ;;  %v122_v29 = vld [vmem:[%s1466_s0 + $0x28] sm:$0xff]  ;;  %v124_v39 = vld [vmem:[%s1466_s0 + $0x38] sm:$0xff] }
   0x7   :  { %101 = vadd.xlane.f32.xlu0 %v100_v17  ;;  %932 = vmatprep.subr.msk.bf16.mxu0 %vm1119_vm1, %v930_v18  ;;  %v667_v30 = vsel %vm99_vm0, %v538_v23, 0.0  ;;  %v669_v31 = vsel %vm99_vm0, %v539_v24, 0.0  ;;  %v540_v32 = vmul.f32 %v121_v28, %v121_v28  ;;  %v541_v33 = vmul.f32 %v122_v29, %v122_v29 }
   0x8   :  { %973 = vmatprep.subr.msk.bf16.mxu1 %vm1119_vm1, %v930_v18  ;;  %v668_v34 = vadd.f32 %v667_v30, %v666_v21  ;;  %v936_v35 = vpack.c.bf16 %v1186_v26, %v1181_v25  ;;  %v542_v40 = vmul.f32 %v123_v37, %v123_v37 }
   0x9   :  { %v671_v36 = vsel %vm99_vm0, %v540_v32, 0.0 }
   0xa   :  { %v670_v38 = vadd.f32 %v669_v31, %v668_v34 }
   0xb   :  { %104 = vadd.xlane.f32.xlu0 %v103_v22 }
   0xc   :  { %12 = vsyncpa [#allocation6], 0  ;;  %v673_v41 = vsel %vm99_vm0, %v541_v33, 0.0  ;;  %v543_v42 = vmul.f32 %v124_v39, %v124_v39  ;;  %v672_v43 = vadd.f32 %v671_v36, %v670_v38  ;;  %v125_v44 = vld [vmem:[%s1466_s0 + $0x40] sm:$0xff]  ;;  %v1220_v45 = vld [vmem:[%s1466_s0 + $0xb0] sm:$0xff]  ;;  %v675_v47 = vsel %vm99_vm0, %v542_v40, 0.0 }
   0xd   :  { %935 = vmatpush3.bf16.xpose.msk.msra.mxu0 %vm1119_vm1, %v933_v27  ;;  %v1225_v46 = vld [vmem:[%s1466_s0 + $0xb8] sm:$0xff]  ;;  %v544_v48 = vmul.f32 %v125_v44, %v125_v44  ;;  %v126_v50 = vld [vmem:[%s1466_s0 + $0x48] sm:$0xff]  ;;  %v939_v51 = vpack.c.bf16 %v122_v29, %v121_v28  ;;  %v127_v56 = vld [vmem:[%s1466_s0 + $0x50] sm:$0xff]  ;;  %v945_v14 = vpack.c.bf16 %v124_v39, %v123_v37  ;;  %v1066_v17 = vmov 0  }
   0xe   :  { %981 = vmatpush3.bf16.xpose.msk.msra.mxu1 %vm1119_vm1, %v933_v27  ;;  %938 = vmatprep.subr.msk.bf16.mxu0 %vm1119_vm1, %v936_v35  ;;  %v674_v49 = vadd.f32 %v673_v41, %v672_v43  ;;  %v677_v52 = vsel %vm99_vm0, %v543_v42, 0.0  ;;  %v545_v53 = vmul.f32 %v126_v50, %v126_v50  ;;  %v942_v54 = vpack.c.bf16 %v1225_v46, %v1220_v45  ;;  %v128_v60 = vld [vmem:[%s1466_s0 + $0x58] sm:$0xff]  ;;  %v129_v2 = vld [vmem:[%s1466_s0 + $0x60] sm:$0xff]  ;;  %v142_v5 = vld [vmem:[%s1466_s0 + $0xc8] sm:$0xff] }
   0xf   :  { %974 = vmatprep.subr.msk.bf16.mxu1 %vm1119_vm1, %v936_v35  ;;  %v679_v57 = vsel %vm99_vm0, %v544_v48, 0.0  ;;  %v546_v58 = vmul.f32 %v127_v56, %v127_v56  ;;  %v547_v62 = vmul.f32 %v128_v60, %v128_v60  ;;  %v1256_v3 = vld [vmem:[%s1466_s0 + $0xc0] sm:$0xff]  ;;  %v548_v8 = vmul.f32 %v129_v2, %v129_v2  ;;  %v130_v10 = vld [vmem:[%s1466_s0 + $0x68] sm:$0xff]  ;;  %994 = vset.pattern.permute.xlu1 %v1066_v17  ;;  %v131_v20 = vld [vmem:[%s1466_s0 + $0x70] sm:$0xff] }
  0x10   :  { %v676_v55 = vadd.f32 %v675_v47, %v674_v49  ;;  %v681_v61 = vsel %vm99_vm0, %v545_v53, 0.0  ;;  %v549_v16 = vmul.f32 %v130_v10, %v130_v10  ;;  %995 = vset.pattern.permute.xlu0 %v1066_v17  ;;  %v948_v18 = vpack.c.bf16 %v142_v5, %v1256_v3  ;;  %v132_v24 = vld [vmem:[%s1466_s0 + $0x78] sm:$0xff]  ;;  %v143_v30 = vld [vmem:[%s1466_s0 + $0xd0] sm:$0xff]  ;;  %v145_v39 = vld [vmem:[%s1466_s0 + $0xe0] sm:$0xff] }
  0x11   :  { %v683_v6 = vsel %vm99_vm0, %v546_v58, 0.0  ;;  %v685_v15 = vsel %vm99_vm0, %v547_v62, 0.0  ;;  %v687_v21 = vsel %vm99_vm0, %v548_v8, 0.0  ;;  %v550_v22 = vmul.f32 %v131_v20, %v131_v20  ;;  %v144_v31 = vld [vmem:[%s1466_s0 + $0xd8] sm:$0xff]  ;;  %v146_v40 = vld [vmem:[%s1466_s0 + $0xe8] sm:$0xff]  ;;  %v147_v43 = vld [vmem:[%s1466_s0 + $0xf0] sm:$0xff] }
  0x12   :  { %v678_v59 = vadd.f32 %v677_v52, %v676_v55  ;;  %v689_v27 = vsel %vm99_vm0, %v549_v16, 0.0  ;;  %v551_v28 = vmul.f32 %v132_v24, %v132_v24  ;;  %v951_v34 = vpack.c.bf16 %v126_v50, %v125_v44  ;;  %v148_v44 = vld [vmem:[%s1466_s0 + $0xf8] sm:$0xff] }
  0x13   :  { %v691_v32 = vsel %vm99_vm0, %v550_v22, 0.0  ;;  %v954_v36 = vpack.c.bf16 %v144_v31, %v143_v30  ;;  %v957_v41 = vpack.c.bf16 %v128_v60, %v127_v56  ;;  %v960_v42 = vpack.c.bf16 %v146_v40, %v145_v39  ;;  %v149_v30 = vld [vmem:[%s1468_s2] sm:$0x3]  ;;  %s1069_s2 = smov [#allocation3]  }
  0x14   :  { %v680_v63 = vadd.f32 %v679_v57, %v678_v59  ;;  %v693_v35 = vsel %vm99_vm0, %v551_v28, 0.0  ;;  %v963_v47 = vpack.c.bf16 %v130_v10, %v129_v2  ;;  %v966_v48 = vpack.c.bf16 %v148_v44, %v147_v43  ;;  %s810_s9 = sshll.u32 %s1069_s2, 4  ;;  %s811_s9 = int_to_ptr.vmem [resolvable:$true] %s810_s9 }
  0x15   :  { %941 = vmatpush3.bf16.xpose.msk.msra.mxu0 %vm1119_vm1, %v939_v51  ;;  %v969_v49 = vpack.c.bf16 %v132_v24, %v131_v20  ;;  %vm106_vm2 = vcmask 7168   ;;  %v553_v4 = vmul.f32 %v1110_v1, %v1110_v1  ;;  %v555_v56 = vmul.f32 %v1146_v13, %v1146_v13  ;;  %s996_s10 = scalar_lea.vmem %s811_s9, 32  ;;  %p1001_p1 = scmp.lt.s32.totalorder %s811_s9, %s811_s9 }
  0x16   :  { %982 = vmatpush3.bf16.xpose.msk.msra.mxu1 %vm1119_vm1, %v939_v51  ;;  %944 = vmatprep.subr.msk.bf16.mxu0 %vm1119_vm1, %v942_v54  ;;  %v682_v9 = vadd.f32 %v681_v61, %v680_v63  ;;  %v556_v59 = vmul.f32 %v1181_v25, %v1181_v25  ;;  %v557_v1 = vmul.f32 %v1186_v26, %v1186_v26  ;;  %v109_v63 = vlaneseq  ;;  %p997_p0 = scmp.ne.s32.totalorder %s811_s9, %s996_s10  ;;  %p1002_p2 = scmp.lt.s32.totalorder %s996_s10, %s996_s10 }
  0x17   :  { %975 = vmatprep.subr.msk.bf16.mxu1 %vm1119_vm1, %v942_v54  ;;  %v552_v54 = vmul.f32 %v1105_v0, %v1105_v0  ;;  %v697_v55 = vsel %vm99_vm0, %v553_v4, 0.0  ;;  %v701_v60 = vsel %vm99_vm0, %v555_v56, 0.0  ;;  %v558_v62 = vmul.f32 %v1220_v45, %v1220_v45 }
  0x18   :  { %v684_v19 = vadd.f32 %v683_v6, %v682_v9  ;;  %v705_v2 = vsel %vm99_vm0, %v557_v1, 0.0  ;;  %v559_v5 = vmul.f32 %v1225_v46, %v1225_v46  ;;  %vm1360_vm3 = vcmp.lt.s32.totalorder %v109_v63, 256  ;;  %p1003_p3 = por %p1002_p2, %p1001_p1 }
  0x19   :  { %114 = vst.msk [vmem:[#allocation5] sm:$0x3] %vm1360_vm3, %v1066_v17  ;;  %v1067_v26 = vmov 0.0   ;;  %v707_v6 = vsel %vm99_vm0, %v558_v62, 0.0  ;;  %v560_v8 = vmul.f32 %v1256_v3, %v1256_v3  ;;  %vm115_vm4 = vcmask 253952  }
  0x1a   :  { %v686_v23 = vadd.f32 %v685_v15, %v684_v19  ;;  %113 = vst.msk [vmem:[#allocation3] sm:$0x3] %vm1360_vm3, %v1067_v26  ;;  %v709_v9 = vsel %vm99_vm0, %v559_v5, 0.0  ;;  %v1375_v3 = vshrl.u32 %v109_v63, 7  ;;  %p1004_p4 = pnand %p1003_p3, %p997_p0 }
  0x1b   :  { %116 = vst.msk [vmem:[#allocation7] sm:$0x1] %vm115_vm4, %v1067_v26 }
  0x1c   :  { %v688_v29 = vadd.f32 %v687_v21, %v686_v23  ;;  %v366_v28 = vsub.s32 0, %v1375_v3  ;;  %v1391_v40 = vadd.s32 8, %v1375_v3 }
  0x1d   :  { %947 = vmatpush3.bf16.xpose.msk.msra.mxu0 %vm1119_vm1, %v945_v14 }
  0x1e   :  { %983 = vmatpush3.bf16.xpose.msk.msra.mxu1 %vm1119_vm1, %v945_v14  ;;  %950 = vmatprep.subr.msk.bf16.mxu0 %vm1119_vm1, %v948_v18  ;;  %v690_v33 = vadd.f32 %v689_v27, %v688_v29  ;;  %v711_v14 = vsel %vm99_vm0, %v560_v8, 0.0  ;;  %v370_v29 = vsub.s32 1, %v1375_v3 }
  0x1f   :  { %976 = vmatprep.subr.msk.bf16.mxu1 %vm1119_vm1, %v948_v18 }
  0x20   :  { %v692_v37 = vadd.f32 %v691_v32, %v690_v33  ;;  %v1382_v33 = vrot.slane %v149_v30, %v366_v28 }
  0x22   :  { %v694_v38 = vadd.f32 %v693_v35, %v692_v37  ;;  %v503_v24 = vld [vmem:[#allocation7] sm:$0x1]  ;;  %vm372_vm5 = vcmp.eq.s32.totalorder %v1375_v3, %v1382_v33  ;;  %vm374_vm7 = vcmp.eq.s32.totalorder %v1391_v40, %v1382_v33 }
  0x25   :  { %953 = vmatpush3.bf16.xpose.msk.msra.mxu0 %vm1119_vm1, %v951_v34 }
  0x26   :  { %984 = vmatpush3.bf16.xpose.msk.msra.mxu1 %vm1119_vm1, %v951_v34  ;;  %956 = vmatprep.subr.msk.bf16.mxu0 %vm1119_vm1, %v954_v36  ;;  %v1384_v34 = vrot.slane %v149_v30, %v370_v29 }
  0x27   :  { %977 = vmatprep.subr.msk.bf16.mxu1 %vm1119_vm1, %v954_v36 }
  0x28   :  { %vm373_vm6 = vcmp.eq.s32.totalorder %v1375_v3, %v1384_v34  ;;  %vm375_vm8 = vcmp.eq.s32.totalorder %v1391_v40, %v1384_v34 }
  0x2d   :  { %959 = vmatpush3.bf16.xpose.msk.msra.mxu0 %vm1119_vm1, %v957_v41 }
  0x2e   :  { %985 = vmatpush3.bf16.xpose.msk.msra.mxu1 %vm1119_vm1, %v957_v41  ;;  %962 = vmatprep.subr.msk.bf16.mxu0 %vm1119_vm1, %v960_v42 }
  0x2f   :  { %978 = vmatprep.subr.msk.bf16.mxu1 %vm1119_vm1, %v960_v42 }
  0x35   :  { %965 = vmatpush3.bf16.xpose.msk.msra.mxu0 %vm1119_vm1, %v963_v47 }
  0x36   :  { %986 = vmatpush3.bf16.xpose.msk.msra.mxu1 %vm1119_vm1, %v963_v47  ;;  %968 = vmatprep.subr.msk.bf16.mxu0 %vm1119_vm1, %v966_v48 }
  0x37   :  { %979 = vmatprep.subr.msk.bf16.mxu1 %vm1119_vm1, %v966_v48 }
  0x3d   :  { %971 = vmatpush3.bf16.xpose.msk.msra.mxu0 %vm1119_vm1, %v969_v49 }
  0x3e   :  { %987 = vmatpush3.bf16.xpose.msk.msra.mxu1 %vm1119_vm1, %v969_v49 }
  0x44   :  { %921 = vmatmul.mubr.msk.f32.vlgmr.msra.gmra.mrb[0].mxu0 %vm99_vm0, %v1129_v7  ;;  %v695_v7 = vsel %vm99_vm0, %v552_v54, 0.0 }
  0x45   :  { %923 = vmatmul.mubr.msk.f32.vlgmr.msra.gmra.mrb[0].mxu1 %vm99_vm0, %v1136_v11  ;;  %v554_v11 = vmul.f32 %v1141_v12, %v1141_v12  ;;  %v696_v57 = vadd.f32 %v695_v7, %v694_v38  ;;  %v703_v12 = vsel %vm99_vm0, %v556_v59, 0.0 }
  0x47   :  { %v699_v58 = vsel %vm99_vm0, %v554_v11, 0.0  ;;  %v698_v0 = vadd.f32 %v697_v55, %v696_v57 }
  0x49   :  { %v700_v61 = vadd.f32 %v699_v58, %v698_v0 }
  0x4b   :  { %v702_v13 = vadd.f32 %v701_v60, %v700_v61 }
  0x4d   :  { %v704_v45 = vadd.f32 %v703_v12, %v702_v13 }
  0x4f   :  { %v706_v46 = vadd.f32 %v705_v2, %v704_v45 }
  0x51   :  { %v708_v10 = vadd.f32 %v707_v6, %v706_v46  ;;  %v152_v6 = vand.u32 127, %v109_v63 }
  0x53   :  { %v710_v15 = vadd.f32 %v709_v9, %v708_v10 }
  0x55   :  { %v712_v16 = vadd.f32 %v711_v14, %v710_v15 }
  0x57   :  { %v727_v18 = vrot.slane %v712_v16, 4 }
  0x59   :  { %v728_v19 = vadd.f32 %v727_v18, %v712_v16 }
  0x5b   :  { %v729_v20 = vrot.slane %v728_v19, 2 }
  0x5d   :  { %v730_v21 = vadd.f32 %v729_v20, %v728_v19 }
  0x5f   :  { %v731_v22 = vrot.slane %v730_v21, 1 }
  0x61   :  { %v732_v23 = vadd.f32 %v731_v22, %v730_v21 }
  0x63   :  { %v733_v27 = vadd.f32 %v732_v23, %v503_v24  ;;  %v1408_v23 = vadd.s32 128, %v152_v6  ;;  %v1068_v24 = vmov 1966171168  }
  0x65   :  { %735 = vst.msk [vmem:[#allocation7] sm:$0x1] %vm115_vm4, %v733_v27  ;;  %v421_v27 = vunpack.c.l.s4 %v1068_v24  ;;  %vm158_vm9 = vcmp.lt.s32.totalorder %v1408_v23, 200 }
  0x94   :  { %v102_v50 = vpop.xlane.xlu0 %101 }
  0x95   :  { %107 = vst.msk [vmem:[#allocation2] sm:$0xff] %vm106_vm2, %v102_v50 }
  0x98   :  { %v105_v51 = vpop.xlane.xlu0 %104 }
  0x99   :  { %108 = vst.msk [vmem:[#allocation2 + $0x8] sm:$0xff] %vm106_vm2, %v105_v51 }
  0x9c   :  { %v341_v52 = vld [vmem:[#allocation2] sm:$0xff] }
  0x9d   :  { %349 = vperm.xlu1 %994, %v341_v52  }
  0xa0   :  { %v342_v53 = vld [vmem:[#allocation2 + $0x8] sm:$0xff] }
  0xa1   :  { %354 = vperm.xlu1 %994, %v342_v53  }
 0x117   :  { %v330_v31 = vpop.f32.mrb[0].mxu0 }
 0x118   :  { %v336_v32 = vpop.f32.mrb[0].mxu1  ;;  %v343_v35 = vmul.f32 2.0, %v330_v31  ;;  %v332_v36 = vpop.f32.mrb[1].mxu0 }
 0x119   :  { %v338_v37 = vpop.f32.mrb[1].mxu1  ;;  %v344_v38 = vmul.f32 2.0, %v332_v36  ;;  %v345_v41 = vmul.f32 2.0, %v336_v32 }
 0x11a   :  { %v346_v44 = vmul.f32 2.0, %v338_v37 }
 0x11c   :  { %v350_v39 = vpop.permute.xlu1 %349 }
 0x11d   :  { %v1393_v42 = vsub.f32 %v350_v39, %v343_v35  ;;  %v1395_v43 = vsub.f32 %v350_v39, %v344_v38 }
 0x11f   :  { %v376_v47 = vsel %vm372_vm5, %v1393_v42, 0.0  ;;  %v377_v48 = vsel %vm373_vm6, %v1395_v43, 0.0 }
 0x120   :  { %v355_v49 = vpop.permute.xlu1 %354 }
 0x121   :  { %v359_v50 = vsub.f32 %v355_v49, %v345_v41  ;;  %v360_v51 = vsub.f32 %v355_v49, %v346_v44  ;;  %v422_v44 = vunpack.c.0.s8 %v421_v27 }
 0x123   :  { %v378_v52 = vsel %vm374_vm7, %v359_v50, 0.0  ;;  %v379_v53 = vsel %vm375_vm8, %v360_v51, 0.0  ;;  %v394_v54 = vadd.f32 %v359_v50, %v1393_v42  ;;  %v401_v4 = vadd.f32 %v360_v51, %v1395_v43 }
 0x124   :  { %v380_v7 = vadd.f32 %v378_v52, %v376_v47  ;;  %v387_v11 = vadd.f32 %v379_v53, %v377_v48  ;;  %v736_v55 = vmin.f32 %v1393_v42, %v359_v50  ;;  %v743_v56 = vmin.f32 %v1395_v43, %v360_v51 }
 0x125   :  { %v395_v57 = vrot.slane %v394_v54, 4  ;;  %v402_v58 = vrot.slane %v401_v4, 4 }
 0x126   :  { %v381_v59 = vrot.slane %v380_v7, 4  ;;  %v388_v0 = vrot.slane %v387_v11, 4  ;;  %v737_v60 = vrot.slane %v736_v55, 4  ;;  %v744_v1 = vrot.slane %v743_v56, 4 }
 0x127   :  { %v396_v61 = vadd.f32 %v395_v57, %v394_v54  ;;  %v403_v12 = vadd.f32 %v402_v58, %v401_v4 }
 0x128   :  { %v382_v62 = vadd.f32 %v381_v59, %v380_v7  ;;  %v389_v13 = vadd.f32 %v388_v0, %v387_v11  ;;  %v738_v2 = vmin.f32 %v736_v55, %v737_v60  ;;  %v745_v5 = vmin.f32 %v743_v56, %v744_v1  ;;  %v416_v60 = vld [vmem:[#allocation3] sm:$0x3] }
 0x129   :  { %v397_v26 = vrot.slane %v396_v61, 2  ;;  %v404_v45 = vrot.slane %v403_v12, 2  ;;  %v425_v11 = vsub.s32 %v422_v44, %v1375_v3 }
 0x12a   :  { %v383_v8 = vrot.slane %v382_v62, 2  ;;  %v390_v46 = vrot.slane %v389_v13, 2  ;;  %v739_v9 = vrot.slane %v738_v2, 2  ;;  %v746_v10 = vrot.slane %v745_v5, 2 }
 0x12b   :  { %v398_v14 = vadd.f32 %v397_v26, %v396_v61  ;;  %v405_v15 = vadd.f32 %v404_v45, %v403_v12 }
 0x12c   :  { %v384_v16 = vadd.f32 %v383_v8, %v382_v62  ;;  %v391_v18 = vadd.f32 %v390_v46, %v389_v13  ;;  %v740_v19 = vmin.f32 %v738_v2, %v739_v9  ;;  %v747_v20 = vmin.f32 %v745_v5, %v746_v10 }
 0x12d   :  { %v399_v21 = vrot.slane %v398_v14, 1  ;;  %v406_v22 = vrot.slane %v405_v15, 1 }
 0x12e   :  { %v385_v28 = vrot.slane %v384_v16, 1  ;;  %v392_v29 = vrot.slane %v391_v18, 1  ;;  %v741_v30 = vrot.slane %v740_v19, 1  ;;  %v748_v63 = vrot.slane %v747_v20, 1 }
 0x12f   :  { %v400_v31 = vadd.f32 %v399_v21, %v398_v14  ;;  %v407_v32 = vadd.f32 %v406_v22, %v405_v15 }
 0x130   :  { %v386_v35 = vadd.f32 %v385_v28, %v384_v16  ;;  %v393_v36 = vadd.f32 %v392_v29, %v391_v18  ;;  %v742_v37 = vmin.f32 %v740_v19, %v741_v30  ;;  %v749_v38 = vmin.f32 %v747_v20, %v748_v63 }
 0x131   :  { %v410_v39 = vmul.f32 0.022222223, %v400_v31  ;;  %v411_v41 = vmul.f32 0.022222223, %v407_v32 }
 0x132   :  { %v409_v47 = vmul.f32 1.0222223, %v393_v36  ;;  %vm750_vm10 = vcmp.eq.f32.partialorder %v1393_v42, %v742_v37  ;;  %vm751_vm11 = vcmp.eq.f32.partialorder %v1395_v43, %v749_v38  ;;  %vm752_vm12 = vcmp.eq.f32.partialorder %v359_v50, %v742_v37 }
 0x133   :  { %vm753_vm13 = vcmp.eq.f32.partialorder %v360_v51, %v749_v38  ;;  %v754_v48 = vsel %vm750_vm10, %v1375_v3, 16  ;;  %v755_v49 = vsel %vm751_vm11, %v1375_v3, 16  ;;  %v756_v52 = vsel %vm752_vm12, %v1391_v40, 16 }
 0x134   :  { %v757_v53 = vsel %vm753_vm13, %v1391_v40, 16  ;;  %vm758_vm14 = vcmp.lt.s32.totalorder %v754_v48, %v756_v52  ;;  %v408_v54 = vmul.f32 1.0222223, %v386_v35  ;;  %v413_v4 = vsub.f32 %v409_v47, %v411_v41 }
 0x135   :  { %v759_v7 = vsel %vm758_vm14, %v754_v48, %v756_v52  ;;  %vm769_vm15 = vcmp.lt.s32.totalorder %v755_v49, %v757_v53 }
 0x136   :  { %v760_v42 = vrot.slane %v759_v7, 4  ;;  %v770_v55 = vsel %vm769_vm15, %v755_v49, %v757_v53  ;;  %v412_v43 = vsub.f32 %v408_v54, %v410_v39  ;;  %v415_v50 = vsel %vm158_vm9, %v413_v4, 0.0 }
 0x137   :  { %v771_v51 = vrot.slane %v770_v55, 4 }
 0x138   :  { %vm761_vm0 = vcmp.lt.s32.totalorder %v759_v7, %v760_v42  ;;  %v419_v56 = vcombine.low %v412_v43, %v415_v50 }
 0x139   :  { %v762_v57 = vsel %vm761_vm0, %v759_v7, %v760_v42  ;;  %vm772_vm1 = vcmp.lt.s32.totalorder %v770_v55, %v771_v51 }
 0x13a   :  { %v763_v58 = vrot.slane %v762_v57, 2  ;;  %v773_v40 = vsel %vm772_vm1, %v770_v55, %v771_v51  ;;  %v426_v59 = vrot.slane %v419_v56, %v425_v11 }
 0x13b   :  { %v774_v0 = vrot.slane %v773_v40, 2 }
 0x13c   :  { %vm764_vm2 = vcmp.lt.s32.totalorder %v762_v57, %v763_v58  ;;  %v433_v3 = vrot.slane %v426_v59, %v425_v11 }
 0x13d   :  { %v765_v1 = vsel %vm764_vm2, %v762_v57, %v763_v58  ;;  %vm775_vm4 = vcmp.lt.s32.totalorder %v773_v40, %v774_v0 }
 0x13e   :  { %v766_v61 = vrot.slane %v765_v1, 1  ;;  %v776_v12 = vsel %vm775_vm4, %v773_v40, %v774_v0  ;;  %v435_v62 = vadd.f32 %v433_v3, %v416_v60 }
 0x13f   :  { %v777_v13 = vrot.slane %v776_v12, 1 }
 0x140   :  { %vm767_vm5 = vcmp.lt.s32.totalorder %v765_v1, %v766_v61  ;;  %440 = vst.msk [vmem:[#allocation3] sm:$0x3] %vm1360_vm3, %v435_v62 }
 0x141   :  { %vm778_vm6 = vcmp.lt.s32.totalorder %v776_v12, %v777_v13  ;;  %v768_v2 = vsel %vm767_vm5, %v765_v1, %v766_v61 }
 0x142   :  { %1007 = shalt.err (!%p1004_p4)
}
 0x143   :  { %s1008_s13 = scalar_lea.hbm %s1469_s3, 32 }
 0x144   :  { %p1009_p5 = scmp.ne.s32.totalorder %s1469_s3, %s1008_s13  ;;  %p1012_p6 = scmp.lt.u32.totalorder %s1008_s13, %s1469_s3 }
 0x146   :  { %p1014_p7 = pnand %p1012_p6, %p1009_p5 }
 0x148   :  { %1017 = shalt.err (!%p1014_p7)
}
 0x149   :  { %813 = dma.vmem_to_hbm [thread:$0]  %s811_s9, 32, %s1469_s3, [#allocation4]   ;;  %v779_v5 = vsel %vm778_vm6, %v776_v12, %v777_v13  ;;  %vm780_vm7 = vcmp.eq.s32.totalorder %v768_v2, %v1382_v33  ;;  %v784_v46 = vld [vmem:[#allocation5] sm:$0x3] }
 0x14a   :  { %vm781_vm8 = vcmp.eq.s32.totalorder %v779_v5, %v1384_v34  ;;  %v785_v26 = vsel %vm780_vm7, 1, %v1066_v17  ;;  %s1070_s20 = smov [#allocation5]   ;;  %s1071_s22 = smov [#allocation7]  }
 0x14b   :  { %vm783_vm10 = vmand %vm781_vm8, %vm158_vm9  ;;  %s820_s21 = sshll.u32 %s1070_s20, 4  ;;  %s830_s3 = sshll.u32 %s1071_s22, 4  ;;  %s821_s21 = int_to_ptr.vmem [resolvable:$true] %s820_s21  ;;  %s831_s3 = int_to_ptr.vmem [resolvable:$true] %s830_s3 }
 0x14c   :  { %v786_v45 = vsel %vm783_vm10, 1, %v1066_v17  ;;  %s1018_s23 = scalar_lea.vmem %s821_s21, 32  ;;  %p1023_p9 = scmp.lt.s32.totalorder %s821_s21, %s821_s21 }
 0x14d   :  { %v787_v6 = vcombine.low %v785_v26, %v786_v45  ;;  %p1019_p8 = scmp.ne.s32.totalorder %s821_s21, %s1018_s23  ;;  %p1024_p10 = scmp.lt.s32.totalorder %s1018_s23, %s1018_s23 }
 0x14f   :  { %v794_v8 = vrot.slane %v787_v6, %v425_v11  ;;  %p1025_p11 = por %p1024_p10, %p1023_p9 }
 0x151   :  { %v801_v9 = vrot.slane %v794_v8, %v425_v11  ;;  %p1026_p12 = pnand %p1025_p11, %p1019_p8 }
 0x153   :  { %v802_v10 = vadd.s32 %v801_v9, %v784_v46 }
 0x155   :  { %803 = vst.msk [vmem:[#allocation5] sm:$0x3] %vm1360_vm3, %v802_v10 }
 0x156   :  { %1029 = shalt.err (!%p1026_p12)
}
 0x157   :  { %s1030_s26 = scalar_lea.hbm %s1470_s4, 32 }
 0x158   :  { %p1031_p13 = scmp.ne.s32.totalorder %s1470_s4, %s1030_s26  ;;  %p1034_p0 = scmp.lt.u32.totalorder %s1030_s26, %s1470_s4 }
 0x15a   :  { %p1036_p1 = pnand %p1034_p0, %p1031_p13 }
 0x15c   :  { %1039 = shalt.err (!%p1036_p1)
}
 0x15d   :  { %823 = dma.vmem_to_hbm [thread:$0]  %s821_s21, 32, %s1470_s4, [#allocation6]  }
 0x15e   :  { %s1040_s8 = scalar_lea.vmem %s831_s3, 16  ;;  %s1044_s0 = scalar_lea.vmem %s831_s3, 32 }
 0x15f   :  { %p1041_p2 = scmp.ne.s32.totalorder %s831_s3, %s1040_s8  ;;  %p1045_p3 = scmp.lt.s32.totalorder %s831_s3, %s831_s3 }
 0x160   :  { %p1046_p4 = scmp.lt.s32.totalorder %s1044_s0, %s1040_s8 }
 0x162   :  { %p1047_p5 = por %p1046_p4, %p1045_p3 }
 0x164   :  { %p1048_p6 = pnand %p1047_p5, %p1041_p2 }
 0x166   :  { %1051 = shalt.err (!%p1048_p6)
}
 0x167   :  { %s1052_s9 = scalar_lea.hbm %s1471_s5, 16 }
 0x168   :  { %p1053_p7 = scmp.ne.s32.totalorder %s1471_s5, %s1052_s9  ;;  %p1056_p8 = scmp.lt.u32.totalorder %s1052_s9, %s1471_s5 }
 0x16a   :  { %p1058_p9 = pnand %p1056_p8, %p1053_p7 }
 0x16c   :  { %1061 = shalt.err (!%p1058_p9)
}
 0x16d   :  { %833 = dma.vmem_to_hbm [thread:$0]  %s831_s3, 16, %s1471_s5, [#allocation6]  }
 0x16e   :  { %1062 = dma.done.wait [#allocation4], 32  }
 0x16f   :  { %1063 = vsyncadd [#allocation4], 4294967264 }
 0x170   :  { %1064 = dma.done.wait [#allocation6], 48  }
 0x171   :  { %1065 = vsyncadd [#allocation6], 4294967248 }
 0x172   :  { %843 = vsyncpa [#allocation4], 1 }
 0x173   :  { %844 = vsyncpa [#allocation6], 1 }

</bundles_post_ra>
